<compile_context>
chip_gen: v7x
topology: tpu7x:2x2x1
jax: 0.10.0
libtpu: 0.0.40
codegen_flags: <defaults>
</compile_context>

<pallas_src>
import jax
import jax.numpy as jnp
from jax.experimental import pallas as pl
from jax.experimental.pallas import tpu as pltpu


def residual_block_kernel(x_ref, w1_ref, b1_ref, w2_ref, b2_ref,
                          w3t_ref, b3_ref, w4t_ref, b4_ref, o_ref):
    """Fused TSMixer residual block on a [bt, S, F] batch tile.

    Per batch b:
        h  = relu(W1 @ x_b + b1)        [d, F]   (temporal: contract S)
        t  = W2 @ h + b2                [S, F]
        x1 = x_b + t
        h2 = relu(x1 @ W3^T + b3)       [S, d]   (feature: contract F)
        f  = h2 @ W4^T + b4             [S, F]
        out_b = x1 + f
    """
    w1 = w1_ref[...]    # [d, S]
    b1 = b1_ref[...]    # [d, 1] f32
    w2 = w2_ref[...]    # [S, d]
    b2 = b2_ref[...]    # [S, 1] f32
    w3t = w3t_ref[...]  # [F, d]
    b3 = b3_ref[...]    # [1, d] f32
    w4t = w4t_ref[...]  # [d, F]
    b4 = b4_ref[...]    # [1, F] f32
    cdt = w1.dtype      # compute/stream dtype (f32 or bf16)

    bt = x_ref.shape[0]
    for i in range(bt):                       # static unroll over the batch tile
        x = x_ref[i]                          # [S, F]
        xc = x.astype(cdt)

        # ---- temporal mixer (column orientation, F on lanes) ----
        h = jnp.dot(w1, xc, preferred_element_type=jnp.float32) + b1      # [d, F] f32
        h = jnp.maximum(h, 0.0).astype(cdt)
        t = jnp.dot(w2, h, preferred_element_type=jnp.float32) + b2       # [S, F] f32
        x1 = x.astype(jnp.float32) + t                                    # residual (f32)

        # ---- feature mixer (row orientation) ----
        x1c = x1.astype(cdt)
        h2 = jnp.dot(x1c, w3t, preferred_element_type=jnp.float32) + b3   # [S, d] f32
        h2 = jnp.maximum(h2, 0.0).astype(cdt)
        f = jnp.dot(h2, w4t, preferred_element_type=jnp.float32) + b4     # [S, F] f32

        # Dropout: identity in eval mode.
        o_ref[i] = (x1 + f).astype(o_ref.dtype)


def _vmem_capacity_bytes():
    """Generation-aware VMEM capacity (64 MiB v7x, 128 MiB v5e/v6e)."""
    try:
        info = pltpu.get_tpu_info()
        cap = getattr(info, "vmem_capacity_bytes", None)
        if cap:
            return int(cap)
    except Exception:
        pass
    return 128 << 20


def _round_up(n, m):
    return -(-n // m) * m


def _pick_batch_tile(B, S, F, d, x_itemsize, w_itemsize, vmem_cap, requested=None):
    """Choose the batch-tile size bt (divides B, keeps >=2 grid steps, fits VMEM)."""
    if requested is None:
        budget = int(0.30 * vmem_cap)
        lane_f = _round_up(max(F, 1), 128)     # VMEM lane padding of the F axis
        lane_d = _round_up(d, 128)
        sub_s = _round_up(S, 8)
        sub_d = _round_up(d, 8)
        # in + out x blocks, each double-buffered by the pipeline
        xblk = sub_s * lane_f * x_itemsize
        # f32 per-batch intermediates (h, x1, h2, f), conservative
        inter = (sub_d * lane_f + 2 * sub_s * lane_f + sub_s * lane_d) * 4
        per_batch = 4 * xblk + inter
        # weights/biases (double-buffered)
        w_bytes = 2 * (2 * d * S + 2 * d * F) * w_itemsize + 2 * 4 * (2 * d + S + F)
        avail = max(budget - w_bytes, per_batch)
        bt = int(max(1, min(avail // per_batch, 16)))   # moderate tile: headroom > giant tiles
    else:
        bt = int(requested)
    if B >= 2:
        bt = min(bt, B // 2)       # v7x: keep >= 2 parallel grid steps for the 2 TensorCores
    bt = max(1, min(bt, B))
    while B % bt:                  # make bt divide B -> no ragged block, no pad/slice round trip
        bt -= 1
    return bt


def residual_block(x, params, batch_tile=None):
    """x: [B, S, F]. params: dict from init_params (weights may be bf16 for streaming)."""
    B, S, F = x.shape
    w1, w2, w3, w4 = params["w1"], params["w2"], params["w3"], params["w4"]
    d = w1.shape[0]

    # Kernel-side orientations (weight-only relayouts; negligible HBM cost).
    b1 = params["b1"].astype(jnp.float32).reshape(d, 1)
    b2 = params["b2"].astype(jnp.float32).reshape(S, 1)
    b3 = params["b3"].astype(jnp.float32).reshape(1, d)
    b4 = params["b4"].astype(jnp.float32).reshape(1, F)
    w3t = w3.T                                            # [F, d]
    w4t = w4.T                                            # [d, F]

    vmem_cap = _vmem_capacity_bytes()
    bt = _pick_batch_tile(B, S, F, d, x.dtype.itemsize, w1.dtype.itemsize,
                          vmem_cap, batch_tile)
    grid = (B // bt,)

    return pl.pallas_call(
        residual_block_kernel,
        out_shape=jax.ShapeDtypeStruct((B, S, F), x.dtype),
        grid_spec=pltpu.PrefetchScalarGridSpec(
            num_scalar_prefetch=0,
            grid=grid,
            in_specs=[
                pl.BlockSpec((bt, S, F), lambda b: (b, 0, 0)),  # x batch tile
                pl.BlockSpec((d, S), lambda b: (0, 0)),         # W1 (VMEM resident)
                pl.BlockSpec((d, 1), lambda b: (0, 0)),         # b1
                pl.BlockSpec((S, d), lambda b: (0, 0)),         # W2
                pl.BlockSpec((S, 1), lambda b: (0, 0)),         # b2
                pl.BlockSpec((F, d), lambda b: (0, 0)),         # W3^T
                pl.BlockSpec((1, d), lambda b: (0, 0)),         # b3
                pl.BlockSpec((d, F), lambda b: (0, 0)),         # W4^T
                pl.BlockSpec((1, F), lambda b: (0, 0)),         # b4
            ],
            out_specs=pl.BlockSpec((bt, S, F), lambda b: (b, 0, 0)),
        ),
        compiler_params=pltpu.CompilerParams(
            dimension_semantics=("parallel",),                 # batch tiles independent
            vmem_limit_bytes=int(0.65 * vmem_cap),             # gen-aware (v7x: 64 MiB phys)
        ),
    )(x, w1, b1, w2, b2, w3t, b3, w4t, b4)


def init_params(key, seq_len, feature_size, d_model):
    """PyTorch-style uniform(+-1/sqrt(fan_in)) init, nn.Linear weight layout."""
    ks = jax.random.split(key, 8)

    def u(k, shape, fan_in):
        bound = 1.0 / jnp.sqrt(fan_in)
        return jax.random.uniform(k, shape, jnp.float32, -bound, bound)

    return {
        # temporal mixer: Linear(S->d), Linear(d->S)
        "w1": u(ks[0], (d_model, seq_len), seq_len),
        "b1": u(ks[1], (d_model,), seq_len),
        "w2": u(ks[2], (seq_len, d_model), d_model),
        "b2": u(ks[3], (seq_len,), d_model),
        # feature mixer: Linear(F->d), Linear(d->F)
        "w3": u(ks[4], (d_model, feature_size), feature_size),
        "b3": u(ks[5], (d_model,), feature_size),
        "w4": u(ks[6], (feature_size, d_model), d_model),
        "b4": u(ks[7], (feature_size,), d_model),
    }


def residual_block_ref(x, p):
    """Pure-JAX reference matching the PyTorch forward (eval mode)."""
    xt = jnp.swapaxes(x, 1, 2)                                  # [B, F, S]
    h = jnp.maximum(xt @ p["w1"].T + p["b1"], 0.0)              # [B, F, d]
    t = h @ p["w2"].T + p["b2"]                                 # [B, F, S]
    x1 = x + jnp.swapaxes(t, 1, 2)
    h2 = jnp.maximum(x1 @ p["w3"].T + p["b3"], 0.0)             # [B, S, d]
    f = h2 @ p["w4"].T + p["b4"]                                # [B, S, F]
    return x1 + f


if __name__ == "__main__":
    key = jax.random.PRNGKey(0)
    kx, kp, kx2, kp2 = jax.random.split(key, 4)

    # Small config (bt=1, grid of 2 -> exercises the >=2-step parallel grid).
    B, S, F, D = 2, 8, 4, 32
    x = jax.random.normal(kx, (B, S, F), dtype=jnp.float32)
    params = init_params(kp, seq_len=S, feature_size=F, d_model=D)
    out = jax.block_until_ready(residual_block(x, params))
    ref = residual_block_ref(x, params)
    assert out.shape == (B, S, F)
    assert jnp.allclose(out, ref, atol=1e-4, rtol=1e-4), "mismatch vs reference (small)"

    # Larger config exercising multi-batch tiles (bt auto-picked to divide B).
    B2, S2, F2, D2 = 90, 16, 8, 64
    x2 = jax.random.normal(kx2, (B2, S2, F2), dtype=jnp.float32)
    params2 = init_params(kp2, seq_len=S2, feature_size=F2, d_model=D2)
    out2 = jax.block_until_ready(residual_block(x2, params2))
    ref2 = residual_block_ref(x2, params2)
    assert out2.shape == (B2, S2, F2)
    assert jnp.allclose(out2, ref2, atol=1e-4, rtol=1e-4), "mismatch vs reference (tiled)"

    # bf16 streaming path: half the HBM bytes, f32 accumulation inside the kernel.
    params_bf16 = {k: (v.astype(jnp.bfloat16) if k.startswith("w") else v)
                   for k, v in params2.items()}
    x2_bf16 = x2.astype(jnp.bfloat16)
    out3 = jax.block_until_ready(residual_block(x2_bf16, params_bf16, batch_tile=6))
    assert out3.shape == (B2, S2, F2)
    assert out3.dtype == jnp.bfloat16
    assert jnp.allclose(out3.astype(jnp.float32), ref2, atol=7e-2, rtol=7e-2), \
        "mismatch vs reference (bf16 streaming)"

    print("KERNEL_OK")
</pallas_src>

<mosaic_0001>
module attributes {stable_mosaic.version = 11 : i64} {
  func.func @residual_block_kernel(%arg0: i32, %arg1: memref<1x8x4xf32, #tpu.memory_space<vmem>>, %arg2: memref<32x8xf32, #tpu.memory_space<vmem>>, %arg3: memref<32x1xf32, #tpu.memory_space<vmem>>, %arg4: memref<8x32xf32, #tpu.memory_space<vmem>>, %arg5: memref<8x1xf32, #tpu.memory_space<vmem>>, %arg6: memref<4x32xf32, #tpu.memory_space<vmem>>, %arg7: memref<1x32xf32, #tpu.memory_space<vmem>>, %arg8: memref<32x4xf32, #tpu.memory_space<vmem>>, %arg9: memref<1x4xf32, #tpu.memory_space<vmem>>, %arg10: memref<1x8x4xf32, #tpu.memory_space<vmem>>) attributes {dimension_semantics = [#tpu.dimension_semantics<parallel>], iteration_bounds = array<i64: 2>, scalar_prefetch = 0 : i64, scratch_operands = 0 : i64, tpu.core_type = #tpu.core_type<tc>, window_params = [{transform_indices = @transform_0, window_bounds = array<i64: 1, 8, 4>}, {pipeline_mode = #tpu.pipeline_mode<synchronous>, transform_indices = @transform_1, window_bounds = array<i64: 32, 8>}, {pipeline_mode = #tpu.pipeline_mode<synchronous>, transform_indices = @transform_2, window_bounds = array<i64: 32, 1>}, {pipeline_mode = #tpu.pipeline_mode<synchronous>, transform_indices = @transform_3, window_bounds = array<i64: 8, 32>}, {pipeline_mode = #tpu.pipeline_mode<synchronous>, transform_indices = @transform_4, window_bounds = array<i64: 8, 1>}, {pipeline_mode = #tpu.pipeline_mode<synchronous>, transform_indices = @transform_5, window_bounds = array<i64: 4, 32>}, {pipeline_mode = #tpu.pipeline_mode<synchronous>, transform_indices = @transform_6, window_bounds = array<i64: 1, 32>}, {pipeline_mode = #tpu.pipeline_mode<synchronous>, transform_indices = @transform_7, window_bounds = array<i64: 32, 4>}, {pipeline_mode = #tpu.pipeline_mode<synchronous>, transform_indices = @transform_8, window_bounds = array<i64: 1, 4>}, {transform_indices = @transform_9, window_bounds = array<i64: 1, 8, 4>}]} {
    %c0 = arith.constant 0 : index
    %c0_0 = arith.constant 0 : index
    %0 = vector.load %arg2[%c0, %c0_0] : memref<32x8xf32, #tpu.memory_space<vmem>>, vector<32x8xf32>
    %c0_1 = arith.constant 0 : index
    %c0_2 = arith.constant 0 : index
    %1 = vector.load %arg3[%c0_1, %c0_2] : memref<32x1xf32, #tpu.memory_space<vmem>>, vector<32x1xf32>
    %c0_3 = arith.constant 0 : index
    %c0_4 = arith.constant 0 : index
    %2 = vector.load %arg4[%c0_3, %c0_4] : memref<8x32xf32, #tpu.memory_space<vmem>>, vector<8x32xf32>
    %c0_5 = arith.constant 0 : index
    %c0_6 = arith.constant 0 : index
    %3 = vector.load %arg5[%c0_5, %c0_6] : memref<8x1xf32, #tpu.memory_space<vmem>>, vector<8x1xf32>
    %c0_7 = arith.constant 0 : index
    %c0_8 = arith.constant 0 : index
    %4 = vector.load %arg6[%c0_7, %c0_8] : memref<4x32xf32, #tpu.memory_space<vmem>>, vector<4x32xf32>
    %c0_9 = arith.constant 0 : index
    %c0_10 = arith.constant 0 : index
    %5 = vector.load %arg7[%c0_9, %c0_10] : memref<1x32xf32, #tpu.memory_space<vmem>>, vector<1x32xf32>
    %c0_11 = arith.constant 0 : index
    %c0_12 = arith.constant 0 : index
    %6 = vector.load %arg8[%c0_11, %c0_12] : memref<32x4xf32, #tpu.memory_space<vmem>>, vector<32x4xf32>
    %c0_13 = arith.constant 0 : index
    %c0_14 = arith.constant 0 : index
    %7 = vector.load %arg9[%c0_13, %c0_14] : memref<1x4xf32, #tpu.memory_space<vmem>>, vector<1x4xf32>
    %c0_15 = arith.constant 0 : index
    %c0_16 = arith.constant 0 : index
    %c0_17 = arith.constant 0 : index
    %8 = vector.load %arg1[%c0_15, %c0_16, %c0_17] : memref<1x8x4xf32, #tpu.memory_space<vmem>>, vector<1x8x4xf32>
    %9 = vector.shape_cast %8 : vector<1x8x4xf32> to vector<8x4xf32>
    %cst = arith.constant dense<0.000000e+00> : vector<32x4xf32>
    %10 = tpu.matmul %0, %9, %cst {dimension_numbers = #tpu.dot_dimension_numbers<[1], [0], [0], [1], [0, 0, 1, 1], [], []>} : vector<32x8xf32>, vector<8x4xf32>, vector<32x4xf32> -> vector<32x4xf32>
    %11 = vector.broadcast %1 : vector<32x1xf32> to vector<32x4xf32>
    %12 = arith.addf %10, %11 : vector<32x4xf32>
    %cst_18 = arith.constant 0.000000e+00 : f32
    %13 = vector.broadcast %cst_18 : f32 to vector<32x4xf32>
    %14 = arith.maximumf %12, %13 : vector<32x4xf32>
    %cst_19 = arith.constant dense<0.000000e+00> : vector<8x4xf32>
    %15 = tpu.matmul %2, %14, %cst_19 {dimension_numbers = #tpu.dot_dimension_numbers<[1], [0], [0], [1], [0, 0, 1, 1], [], []>} : vector<8x32xf32>, vector<32x4xf32>, vector<8x4xf32> -> vector<8x4xf32>
    %16 = vector.broadcast %3 : vector<8x1xf32> to vector<8x4xf32>
    %17 = arith.addf %15, %16 : vector<8x4xf32>
    %18 = arith.addf %9, %17 : vector<8x4xf32>
    %cst_20 = arith.constant dense<0.000000e+00> : vector<8x32xf32>
    %19 = tpu.matmul %18, %4, %cst_20 {dimension_numbers = #tpu.dot_dimension_numbers<[1], [0], [0], [1], [0, 0, 1, 1], [], []>} : vector<8x4xf32>, vector<4x32xf32>, vector<8x32xf32> -> vector<8x32xf32>
    %20 = vector.broadcast %5 : vector<1x32xf32> to vector<8x32xf32>
    %21 = arith.addf %19, %20 : vector<8x32xf32>
    %cst_21 = arith.constant 0.000000e+00 : f32
    %22 = vector.broadcast %cst_21 : f32 to vector<8x32xf32>
    %23 = arith.maximumf %21, %22 : vector<8x32xf32>
    %cst_22 = arith.constant dense<0.000000e+00> : vector<8x4xf32>
    %24 = tpu.matmul %23, %6, %cst_22 {dimension_numbers = #tpu.dot_dimension_numbers<[1], [0], [0], [1], [0, 0, 1, 1], [], []>} : vector<8x32xf32>, vector<32x4xf32>, vector<8x4xf32> -> vector<8x4xf32>
    %25 = vector.broadcast %7 : vector<1x4xf32> to vector<8x4xf32>
    %26 = arith.addf %24, %25 : vector<8x4xf32>
    %27 = arith.addf %18, %26 : vector<8x4xf32>
    %c0_23 = arith.constant 0 : index
    %c0_24 = arith.constant 0 : index
    %c0_25 = arith.constant 0 : index
    %28 = vector.load %arg10[%c0_23, %c0_24, %c0_25] : memref<1x8x4xf32, #tpu.memory_space<vmem>>, vector<1x8x4xf32>
    %29 = vector.shape_cast %28 : vector<1x8x4xf32> to vector<8x4xf32>
    %30 = vector.shape_cast %27 : vector<8x4xf32> to vector<1x8x4xf32>
    tpu.vector_store %arg10[%c0_23, %c0_24, %c0_25], %30 {strides = array<i32>} : memref<1x8x4xf32, #tpu.memory_space<vmem>>, vector<1x8x4xf32>,
    return
  }
  func.func @transform_0(%arg0: i32) -> (i32, i32, i32) {
    %c0_i32 = arith.constant 0 : i32
    %c0_i32_0 = arith.constant 0 : i32
    %c0_i32_1 = arith.constant 0 : i32
    return %arg0, %c0_i32, %c0_i32_0 : i32, i32, i32
  }
  func.func @transform_1(%arg0: i32) -> (i32, i32) {
    %c0_i32 = arith.constant 0 : i32
    %c0_i32_0 = arith.constant 0 : i32
    %c0_i32_1 = arith.constant 0 : i32
    return %c0_i32, %c0_i32_0 : i32, i32
  }
  func.func @transform_2(%arg0: i32) -> (i32, i32) {
    %c0_i32 = arith.constant 0 : i32
    %c0_i32_0 = arith.constant 0 : i32
    %c0_i32_1 = arith.constant 0 : i32
    return %c0_i32, %c0_i32_0 : i32, i32
  }
  func.func @transform_3(%arg0: i32) -> (i32, i32) {
    %c0_i32 = arith.constant 0 : i32
    %c0_i32_0 = arith.constant 0 : i32
    %c0_i32_1 = arith.constant 0 : i32
    return %c0_i32, %c0_i32_0 : i32, i32
  }
  func.func @transform_4(%arg0: i32) -> (i32, i32) {
    %c0_i32 = arith.constant 0 : i32
    %c0_i32_0 = arith.constant 0 : i32
    %c0_i32_1 = arith.constant 0 : i32
    return %c0_i32, %c0_i32_0 : i32, i32
  }
  func.func @transform_5(%arg0: i32) -> (i32, i32) {
    %c0_i32 = arith.constant 0 : i32
    %c0_i32_0 = arith.constant 0 : i32
    %c0_i32_1 = arith.constant 0 : i32
    return %c0_i32, %c0_i32_0 : i32, i32
  }
  func.func @transform_6(%arg0: i32) -> (i32, i32) {
    %c0_i32 = arith.constant 0 : i32
    %c0_i32_0 = arith.constant 0 : i32
    %c0_i32_1 = arith.constant 0 : i32
    return %c0_i32, %c0_i32_0 : i32, i32
  }
  func.func @transform_7(%arg0: i32) -> (i32, i32) {
    %c0_i32 = arith.constant 0 : i32
    %c0_i32_0 = arith.constant 0 : i32
    %c0_i32_1 = arith.constant 0 : i32
    return %c0_i32, %c0_i32_0 : i32, i32
  }
  func.func @transform_8(%arg0: i32) -> (i32, i32) {
    %c0_i32 = arith.constant 0 : i32
    %c0_i32_0 = arith.constant 0 : i32
    %c0_i32_1 = arith.constant 0 : i32
    return %c0_i32, %c0_i32_0 : i32, i32
  }
  func.func @transform_9(%arg0: i32) -> (i32, i32, i32) {
    %c0_i32 = arith.constant 0 : i32
    %c0_i32_0 = arith.constant 0 : i32
    %c0_i32_1 = arith.constant 0 : i32
    return %arg0, %c0_i32, %c0_i32_0 : i32, i32, i32
  }
}

</mosaic_0001>

<bundles_post_ra>
// kernel: tpu_custom_call.1
= control target key start
LH: loop header
LB: loop body
LE: loop exit
PB: predicated region body
PF: predicated region fallthrough
CT: control target
= control target key end

     0   :  { %s2030_s0 = inlined_call_operand.hbm [shape: f32[2,8,4], index: 0, kind: input, shape index: {}]   ;;  %s2031_s1 = inlined_call_operand.hbm [shape: f32[32,8], index: 1, kind: input, shape index: {}]   ;;  %s2032_s2 = inlined_call_operand.hbm [shape: f32[32,1], index: 2, kind: input, shape index: {}]   ;;  %s2033_s3 = inlined_call_operand.hbm [shape: f32[8,32], index: 3, kind: input, shape index: {}]   ;;  %s2034_s4 = inlined_call_operand.hbm [shape: f32[8,1], index: 4, kind: input, shape index: {}]   ;;  %s2035_s5 = inlined_call_operand.hbm [shape: f32[4,32], index: 5, kind: input, shape index: {}]   ;;  %s2036_s6 = inlined_call_operand.hbm [shape: f32[1,32], index: 6, kind: input, shape index: {}]   ;;  %s2037_s7 = inlined_call_operand.hbm [shape: f32[32,4], index: 7, kind: input, shape index: {}]   ;;  %s2038_s8 = inlined_call_operand.hbm [shape: f32[1,4], index: 8, kind: input, shape index: {}]   ;;  %s2039_s9 = inlined_call_operand.hbm [shape: f32[2,8,4], index: 9, kind: output, shape index: {}]  }
   0x1   :  { %2046 = sst [smem:[#allocation24_spill]] %s2031_s1 }
   0x2   :  { %2047 = sst [smem:[#allocation25_spill]] %s2039_s9 }
   0x3   :  { %14 = vsyncpa [#allocation3], 0 }
   0x4   :  { %16 = vsyncpa [#allocation3 + $0x1], 0 }
   0x5   :  { %17 = vsyncpa [#allocation6], 0 }
   0x6   :  { %18 = vsyncpa [#allocation9], 0 }
   0x7   :  { %19 = vsyncpa [#allocation12], 0 }
   0x8   :  { %20 = vsyncpa [#allocation15], 0 }
   0x9   :  { %21 = vsyncpa [#allocation4], 0 }
   0xa   :  { %23 = vsyncpa [#allocation4 + $0x1], 0  ;;  %s1641_s30 = smov 0   ;;  %s1643_s10 = smov 0  }
   0xb   :  { %s1645_s11 = smov 0   ;;  %s1647_s12 = smov 0  }
   0xc LB: > { %s1575_s13 = smov [#allocation5]   ;;  %s1662_s15 = sadd.s32 4294967295, %s1573_s12   ;;  %s1573_s12 = sphi %s1647_s12, %s2075_s12   ;;  %s1569_s11 = sphi %s1645_s11, %s2074_s11   ;;  %s1565_s10 = sphi %s1643_s10, %s2073_s10   ;;  %s1561_s30 = sphi %s1641_s30, %s2072_s30  }
   0xd   : > { %s266_s14 = sshll.u32 %s1575_s13, 4  ;;  %p1001_p0 = scmp.ge.s32.totalorder %s1573_s12, 1  ;;  %s1667_s14 = int_to_ptr.vmem [resolvable:$true] %s266_s14 }
   0xe   : > { %p2043_p1 = scmp.eq.s32.totalorder %s1662_s15, 0  ;;  %p254_p2 = scmp.lt.s32.totalorder %s1573_s12, 3 }
   0xf   : > { %s1576_s17 = smov [#allocation8]   ;;  %s1577_s20 = smov [#allocation11]  }
  0x10   : > { %p1669_p3 = pnand %p1001_p0, %p254_p2  ;;  %s293_s18 = sshll.u32 %s1576_s17, 4  ;;  %s1682_s18 = int_to_ptr.vmem [resolvable:$true] %s293_s18 }
  0x11   : > { %s315_s21 = sshll.u32 %s1577_s20, 4  ;;  %s2050_s1 = sld [smem:[#allocation24_spill]]  ;;  %s1684_s21 = int_to_ptr.vmem [resolvable:$true] %s315_s21 }
  0x12   : > { %s2048_s16 = scalar_select %p1669_p3, 1, 0 }
  0x13   : > { %p1138_p5 = pneg %p1669_p3 }
  0x15   : > { %p1678_p6 = pnand %p1138_p5, %p2043_p1 }
  0x17   : > { %s1237_s24 = scalar_lea.hbm %s2050_s1, 512  ;;  %p1694_p8 = pneg %p1678_p6 }
  0x18   : > { %p1238_p7 = scmp.ne.s32.totalorder %s2050_s1, %s1237_s24  ;;  %p1244_p11 = scmp.lt.u32.totalorder %s1237_s24, %s2050_s1 }
  0x1a   : > { %p1240_p9 = pnand %p1694_p8, %p1238_p7 }
  0x1c   : > { %p1241_p10 = pneg %p1240_p9 }
  0x1e   : > { %p1246_p12 = pnand %p1244_p11, %p1241_p10 }
  0x20   : > { %1249 = shalt.err (!%p1246_p12)
}
  0x21   : > { %s1250_s13 = scalar_lea.vmem %s1667_s14, 512  ;;  %p1258_p5 = scmp.lt.s32.totalorder %s1667_s14, %s1667_s14 }
  0x22   : > { %p1251_p13 = scmp.ne.s32.totalorder %s1667_s14, %s1250_s13  ;;  %p1259_p4 = scmp.lt.s32.totalorder %s1250_s13, %s1250_s13 }
  0x24   : > { %p1253_p0 = pnand %p1251_p13, %p1694_p8  ;;  %p1260_p7 = por %p1259_p4, %p1258_p5 }
  0x26   : > { %p1254_p2 = pneg %p1253_p0 }
  0x28   : > { %p1261_p9 = pnand %p1260_p7, %p1254_p2 }
  0x2a   : > { %1264 = shalt.err (!%p1261_p9)
}
  0x2b   : > { %s2041_s17 = smov 128   ;;  %s1579_s20 = smov 8  }
  0x2c   : > { %1141 = dma.hbm_to_vmem [thread:$0]  (!%p1678_p6), %s2050_s1, 512, %s1667_s14, [#allocation6], %s2041_s17, %s2041_s17, %s1579_s20  }
  0x2d   : > { %s1265_s26 = scalar_lea.hbm %s2033_s3, 128 }
  0x2e   : > { %p1266_p4 = scmp.ne.s32.totalorder %s2033_s3, %s1265_s26  ;;  %p1272_p12 = scmp.lt.u32.totalorder %s1265_s26, %s2033_s3 }
  0x30   : > { %p1268_p10 = pnand %p1266_p4, %p1694_p8 }
  0x32   : > { %p1269_p11 = pneg %p1268_p10 }
  0x34   : > { %p1274_p13 = pnand %p1272_p12, %p1269_p11 }
  0x36   : > { %1277 = shalt.err (!%p1274_p13)
}
  0x37   : > { %s1278_s14 = scalar_lea.vmem %s1682_s18, 128  ;;  %p1286_p7 = scmp.lt.s32.totalorder %s1682_s18, %s1682_s18 }
  0x38   : > { %p1279_p0 = scmp.ne.s32.totalorder %s1682_s18, %s1278_s14  ;;  %p1287_p9 = scmp.lt.s32.totalorder %s1278_s14, %s1278_s14 }
  0x3a   : > { %p1281_p2 = pnand %p1279_p0, %p1694_p8  ;;  %p1288_p4 = por %p1287_p9, %p1286_p7 }
  0x3c   : > { %p1282_p5 = pneg %p1281_p2 }
  0x3e   : > { %p1289_p10 = pnand %p1288_p4, %p1282_p5 }
  0x40   : > { %1292 = shalt.err (!%p1289_p10)
}
  0x41   : > { %1147 = dma.hbm_to_vmem [thread:$0]  (!%p1678_p6), %s2033_s3, 128, %s1682_s18, [#allocation9]  }
  0x42   : > { %s1293_s25 = scalar_lea.hbm %s2035_s5, 64 }
  0x43   : > { %p1294_p11 = scmp.ne.s32.totalorder %s2035_s5, %s1293_s25  ;;  %p1300_p0 = scmp.lt.u32.totalorder %s1293_s25, %s2035_s5 }
  0x45   : > { %p1296_p12 = pnand %p1294_p11, %p1694_p8 }
  0x47   : > { %p1297_p13 = pneg %p1296_p12 }
  0x49   : > { %p1302_p2 = pnand %p1300_p0, %p1297_p13 }
  0x4b   : > { %1305 = shalt.err (!%p1302_p2)
}
  0x4c   : > { %s1306_s18 = scalar_lea.vmem %s1684_s21, 64  ;;  %p1314_p4 = scmp.lt.s32.totalorder %s1684_s21, %s1684_s21 }
  0x4d   : > { %p1307_p5 = scmp.ne.s32.totalorder %s1684_s21, %s1306_s18  ;;  %p1315_p10 = scmp.lt.s32.totalorder %s1306_s18, %s1306_s18 }
  0x4f   : > { %p1309_p7 = pnand %p1307_p5, %p1694_p8  ;;  %p1316_p11 = por %p1315_p10, %p1314_p4 }
  0x51   : > { %p1310_p9 = pneg %p1309_p7 }
  0x53   : > { %p1317_p12 = pnand %p1316_p11, %p1310_p9 }
  0x55   : > { %1320 = shalt.err (!%p1317_p12)
}
  0x56   : > { %1153 = dma.hbm_to_vmem [thread:$0]  (!%p1678_p6), %s2035_s5, 64, %s1684_s21, [#allocation12]  }
  0x57   : > { %s1580_s22 = smov [#allocation14]   ;;  %s1581_s24 = smov [#allocation7]  }
  0x58   : > { %s336_s23 = sshll.u32 %s1580_s22, 4  ;;  %s279_s25 = sshll.u32 %s1581_s24, 4  ;;  %s337_s23 = int_to_ptr.vmem [resolvable:$true] %s336_s23  ;;  %s280_s25 = int_to_ptr.vmem [resolvable:$true] %s279_s25 }
  0x59   : > { %s1321_s29 = scalar_lea.hbm %s2037_s7, 512 }
  0x5a   : > { %p1322_p13 = scmp.ne.s32.totalorder %s2037_s7, %s1321_s29  ;;  %p1328_p5 = scmp.lt.u32.totalorder %s1321_s29, %s2037_s7 }
  0x5c   : > { %p1324_p0 = pnand %p1322_p13, %p1694_p8 }
  0x5e   : > { %p1325_p2 = pneg %p1324_p0 }
  0x60   : > { %p1330_p7 = pnand %p1328_p5, %p1325_p2 }
  0x62   : > { %1333 = shalt.err (!%p1330_p7)
}
  0x63   : > { %s1334_s21 = scalar_lea.vmem %s337_s23, 512  ;;  %p1342_p11 = scmp.lt.s32.totalorder %s337_s23, %s337_s23 }
  0x64   : > { %p1335_p9 = scmp.ne.s32.totalorder %s337_s23, %s1334_s21  ;;  %p1343_p12 = scmp.lt.s32.totalorder %s1334_s21, %s1334_s21 }
  0x66   : > { %p1337_p4 = pnand %p1335_p9, %p1694_p8  ;;  %p1344_p1 = por %p1343_p12, %p1342_p11 }
  0x68   : > { %p1338_p10 = pneg %p1337_p4 }
  0x6a   : > { %p1345_p3 = pnand %p1344_p1, %p1338_p10 }
  0x6c   : > { %1348 = shalt.err (!%p1345_p3)
}
  0x6d   : > { %s2052_s9 = smov 128   ;;  %s1349_s28 = scalar_lea.hbm %s2032_s2, 512 }
  0x6e   : > { %1159 = dma.hbm_to_vmem [thread:$0]  (!%p1678_p6), %s2037_s7, 512, %s337_s23, [#allocation15], %s2052_s9, %s2052_s9, %s1579_s20  }
  0x6f   : > { %p1350_p1 = scmp.ne.s32.totalorder %s2032_s2, %s1349_s28  ;;  %p1356_p0 = scmp.lt.u32.totalorder %s1349_s28, %s2032_s2 }
  0x71   : > { %p1352_p3 = pnand %p1350_p1, %p1694_p8 }
  0x73   : > { %p1353_p13 = pneg %p1352_p3 }
  0x75   : > { %p1358_p2 = pnand %p1356_p0, %p1353_p13 }
  0x77   : > { %1361 = shalt.err (!%p1358_p2)
}
  0x78   : > { %s1362_s21 = scalar_lea.vmem %s280_s25, 512  ;;  %p1370_p4 = scmp.lt.s32.totalorder %s280_s25, %s280_s25 }
  0x79   : > { %p1363_p5 = scmp.ne.s32.totalorder %s280_s25, %s1362_s21  ;;  %p1371_p10 = scmp.lt.s32.totalorder %s1362_s21, %s1362_s21 }
  0x7b   : > { %p1365_p7 = pnand %p1363_p5, %p1694_p8  ;;  %p1372_p11 = por %p1371_p10, %p1370_p4 }
  0x7d   : > { %p1366_p9 = pneg %p1365_p7 }
  0x7f   : > { %p1373_p12 = pnand %p1372_p11, %p1366_p9 }
  0x81   : > { %1376 = shalt.err (!%p1373_p12)
}
  0x82   : > { %1144 = dma.hbm_to_vmem [thread:$0]  (!%p1678_p6), %s2032_s2, 512, %s280_s25, [#allocation6], %s2052_s9, %s2052_s9, %s1579_s20  }
  0x83   : > { %s1582_s22 = smov [#allocation10]   ;;  %s1583_s26 = smov [#allocation13]  }
  0x84   : > { %s304_s24 = sshll.u32 %s1582_s22, 4  ;;  %s326_s28 = sshll.u32 %s1583_s26, 4  ;;  %s305_s24 = int_to_ptr.vmem [resolvable:$true] %s304_s24  ;;  %s327_s28 = int_to_ptr.vmem [resolvable:$true] %s326_s28 }
  0x85   : > { %s1377_s18 = scalar_lea.hbm %s2034_s4, 128 }
  0x86   : > { %p1378_p1 = scmp.ne.s32.totalorder %s2034_s4, %s1377_s18  ;;  %p1384_p0 = scmp.lt.u32.totalorder %s1377_s18, %s2034_s4 }
  0x88   : > { %p1380_p3 = pnand %p1378_p1, %p1694_p8 }
  0x8a   : > { %p1381_p13 = pneg %p1380_p3 }
  0x8c   : > { %p1386_p2 = pnand %p1384_p0, %p1381_p13 }
  0x8e   : > { %1389 = shalt.err (!%p1386_p2)
}
  0x8f   : > { %s1390_s20 = scalar_lea.vmem %s305_s24, 128  ;;  %p1398_p4 = scmp.lt.s32.totalorder %s305_s24, %s305_s24 }
  0x90   : > { %p1391_p5 = scmp.ne.s32.totalorder %s305_s24, %s1390_s20  ;;  %p1399_p10 = scmp.lt.s32.totalorder %s1390_s20, %s1390_s20 }
  0x92   : > { %p1393_p7 = pnand %p1391_p5, %p1694_p8  ;;  %p1400_p11 = por %p1399_p10, %p1398_p4 }
  0x94   : > { %p1394_p9 = pneg %p1393_p7 }
  0x96   : > { %p1401_p12 = pnand %p1400_p11, %p1394_p9 }
  0x98   : > { %1404 = shalt.err (!%p1401_p12)
}
  0x99   : > { %1150 = dma.hbm_to_vmem [thread:$0]  (!%p1678_p6), %s2034_s4, 128, %s305_s24, [#allocation9]  }
  0x9a   : > { %s1405_s22 = scalar_lea.hbm %s2036_s6, 16 }
  0x9b   : > { %p1406_p1 = scmp.ne.s32.totalorder %s2036_s6, %s1405_s22  ;;  %p1412_p0 = scmp.lt.u32.totalorder %s1405_s22, %s2036_s6 }
  0x9d   : > { %p1408_p3 = pnand %p1406_p1, %p1694_p8 }
  0x9f   : > { %p1409_p13 = pneg %p1408_p3 }
  0xa1   : > { %p1414_p2 = pnand %p1412_p0, %p1409_p13 }
  0xa3   : > { %1417 = shalt.err (!%p1414_p2)
}
  0xa4   : > { %s1418_s14 = scalar_lea.vmem %s327_s28, 16  ;;  %s1425_s24 = scalar_lea.vmem %s327_s28, 32 }
  0xa5   : > { %p1419_p5 = scmp.ne.s32.totalorder %s327_s28, %s1418_s14  ;;  %p1426_p4 = scmp.lt.s32.totalorder %s327_s28, %s327_s28 }
  0xa6   : > { %p1427_p10 = scmp.lt.s32.totalorder %s1425_s24, %s1418_s14 }
  0xa7   : > { %p1421_p7 = pnand %p1419_p5, %p1694_p8 }
  0xa8   : > { %p1428_p11 = por %p1427_p10, %p1426_p4 }
  0xa9   : > { %p1422_p9 = pneg %p1421_p7 }
  0xab   : > { %p1429_p12 = pnand %p1428_p11, %p1422_p9 }
  0xad   : > { %1432 = shalt.err (!%p1429_p12)
}
  0xae   : > { %1156 = dma.hbm_to_vmem [thread:$0]  (!%p1678_p6), %s2036_s6, 16, %s327_s28, [#allocation12]  }
  0xaf   : > { %s1584_s20 = smov [#allocation16]   ;;  %s1433_s17 = scalar_lea.hbm %s2038_s8, 16 }
  0xb0   : > { %s350_s25 = sshll.u32 %s1584_s20, 4  ;;  %p1434_p1 = scmp.ne.s32.totalorder %s2038_s8, %s1433_s17  ;;  %s351_s25 = int_to_ptr.vmem [resolvable:$true] %s350_s25 }
  0xb1   : > { %p1440_p0 = scmp.lt.u32.totalorder %s1433_s17, %s2038_s8 }
  0xb2   : > { %p1436_p3 = pnand %p1434_p1, %p1694_p8 }
  0xb4   : > { %p1437_p13 = pneg %p1436_p3 }
  0xb6   : > { %p1442_p2 = pnand %p1440_p0, %p1437_p13 }
  0xb8   : > { %1445 = shalt.err (!%p1442_p2)
}
  0xb9   : > { %s1446_s28 = scalar_lea.vmem %s351_s25, 16  ;;  %s1453_s18 = scalar_lea.vmem %s351_s25, 32 }
  0xba   : > { %p1447_p5 = scmp.ne.s32.totalorder %s351_s25, %s1446_s28  ;;  %p1454_p4 = scmp.lt.s32.totalorder %s351_s25, %s351_s25 }
  0xbb   : > { %p1455_p10 = scmp.lt.s32.totalorder %s1453_s18, %s1446_s28 }
  0xbc   : > { %p1449_p7 = pnand %p1447_p5, %p1694_p8 }
  0xbd   : > { %p1456_p11 = por %p1455_p10, %p1454_p4 }
  0xbe   : > { %p1450_p9 = pneg %p1449_p7 }
  0xc0   : > { %p1457_p12 = pnand %p1456_p11, %p1450_p9 }
  0xc2   : > { %1460 = shalt.err (!%p1457_p12)
}
  0xc3   : > { %1162 = dma.hbm_to_vmem [thread:$0]  (!%p1678_p6), %s2038_s8, 16, %s351_s25, [#allocation15]  }
  0xc4   : > { %s1000_s27 = sadd.s32 4294967294, %s1573_s12   ;;  %s1862_s19 = sadd.s32 1, %s1573_s12  }
  0xc5   : > { %s33_s21 = ssub.s32 %s1573_s12, %s1862_s19  ;;  %s36_s23 = sadd.s32 1, %s1569_s11 }
  0xc6   : > { %p34_p8 = scmp.eq.s32.totalorder %s33_s21, 0  ;;  %p43_p1 = scmp.ne.s32.totalorder %s1569_s11, %s1565_s10 }
  0xc7   : > { %p44_p3 = scmp.eq.s32.totalorder %s1573_s12, 0  ;;  %p49_p13 = scmp.ne.s32.totalorder %s1565_s10, %s1561_s30 }
  0xc8   : > { %s1873_s20 = scalar_select %p34_p8, %s1569_s11, %s36_s23  }
  0xc9   : > { %p1875_p0 = por %p44_p3, %p43_p1  ;;  %p2054_p2 = scmp.eq.s32.totalorder %s1662_s15, 0 }
  0xca   : > { %p241_p5 = scmp.eq.s32.totalorder %s1662_s15, 1  ;;  %p247_p7 = scmp.eq.s32.totalorder %s1000_s27, 1 }
  0xcb   : > { %p1881_p6 = por %p2054_p2, %p49_p13  ;;  %p1179_p9 = scmp.lt.s32.totalorder %s1573_s12, 2 }
  0xcc   : > { %s361_s1 = sand.u32 1, %s1569_s11   ;;  %p1888_p4 = por %p241_p5, %p43_p1 }
  0xcd   : > { %p1892_p10 = por %p247_p7, %p49_p13  ;;  %s1011_s26 = sshll.u32 %s361_s1, 3 }
  0xce   : > { %s2056_s17 = scalar_select %p1888_p4, 1, 0 }
  0xcf   : > { %s2057_s22 = scalar_select %p1892_p10, 1, 0 }
  0xd0   : > { %s1012_s29 = sshll.u32 %s1573_s12, 7  ;;  %s365_s14 = scalar_lea.vmem [#allocation2], %s1011_s26 }
  0xd1   : > { %s1900_s18 = scalar_lea.hbm %s2030_s0, %s1012_s29  ;;  %s372_s24 = sshll.u32 %s365_s14, 4  ;;  %s1902_s24 = int_to_ptr.vmem [resolvable:$true] %s372_s24 }
  0xd2   : > { %p1906_p11 = pnand %p1179_p9, %p1875_p0  ;;  %s362_s21 = scalar_lea.sflag [#allocation3], %s361_s1 }
  0xd3   : > { %s1461_s23 = scalar_lea.hbm %s1900_s18, 128  ;;  %s1466_s13 = scalar_lea.hbm %s2030_s0, 256 }
  0xd4   : > { %p1462_p12 = scmp.ne.s32.totalorder %s1900_s18, %s1461_s23  ;;  %p1463_p8 = pneg %p1906_p11 }
  0xd5   : > { %p1467_p13 = scmp.lt.u32.totalorder %s1900_s18, %s2030_s0  ;;  %p1468_p0 = scmp.lt.u32.totalorder %s1466_s13, %s1461_s23 }
  0xd6   : > { %p1464_p1 = pnand %p1463_p8, %p1462_p12  ;;  %p1470_p5 = scmp.lt.u32.totalorder %s1461_s23, %s1900_s18 }
  0xd7   : > { %p1469_p2 = por %p1468_p0, %p1467_p13 }
  0xd8   : > { %p1465_p3 = pneg %p1464_p1 }
  0xd9   : > { %p1471_p7 = por %p1470_p5, %p1469_p2 }
  0xdb   : > { %p1472_p9 = pnand %p1471_p7, %p1465_p3 }
  0xdd   : > { %1475 = shalt.err (!%p1472_p9)
}
  0xde   : > { %s1476_s1 = scalar_lea.vmem %s1902_s24, 128  ;;  %s1585_s14 = smov [#allocation2]  }
  0xdf   : > { %p1477_p12 = scmp.ne.s32.totalorder %s1902_s24, %s1476_s1  ;;  %s1481_s26 = sshll.u32 %s1585_s14, 4  ;;  %s1482_s26 = int_to_ptr.vmem [resolvable:$false] %s1481_s26 }
  0xe0   : > { %s1483_s29 = scalar_lea.vmem %s1482_s26, 256  ;;  %p1484_p4 = scmp.lt.s32.totalorder %s1902_s24, %s1482_s26 }
  0xe1   : > { %p1479_p1 = pnand %p1477_p12, %p1463_p8  ;;  %p1485_p13 = scmp.lt.s32.totalorder %s1483_s29, %s1476_s1 }
  0xe3   : > { %p1480_p10 = pneg %p1479_p1  ;;  %p1486_p0 = por %p1485_p13, %p1484_p4 }
  0xe5   : > { %p1487_p2 = pnand %p1486_p0, %p1480_p10 }
  0xe7   : > { %1490 = shalt.err (!%p1487_p2)
}
  0xe8   : > { %1166 = dma.hbm_to_vmem [thread:$0]  (!%p1906_p11), %s1900_s18, 128, %s1902_s24, %s362_s21  }
  0xe9   : > { %p2059_p3 = scmp.ne.s32.totalorder %s2048_s16, 0 }
  0xea   : > { %s1938_s23 = sand.u32 (!%p2059_p3), 1, %s1565_s10  }
  0xeb   : > { %381 = sbr.rel (%p2059_p3) target bundleno = 1147 (0x47b), region = 56  ;;  %s1014_s13 = sshll.u32 (!%p2059_p3), %s1938_s23, 3 }
  0xec   : > { %s384_s9 = scalar_lea.sflag (!%p2059_p3), [#allocation3], %s1938_s23  ;;  %s387_s28 = scalar_lea.vmem (!%p2059_p3), [#allocation2], %s1014_s13 }
  0xf2   : > { %1536 = dma.done.wait (%p1881_p6), %s384_s9, 128  }
  0xf3   : > { %1538 = vsyncadd (%p1881_p6), %s384_s9, 4294967168  ;;  %p2060_p4 = scmp.eq.s32.totalorder %s1662_s15, 0 }
  0xf5   : > { %1540 = dma.done.wait (%p2060_p4), [#allocation6], 1024   ;;  %p2061_p10 = pmov %p2060_p4 }
  0xf6   : > { %p2062_p11 = pmov %p2060_p4 }
  0xf7   : > { %1542 = vsyncadd (%p2061_p10), [#allocation6], 4294966272 }
  0xf8   : > { %1544 = dma.done.wait (%p2062_p11), [#allocation9], 256   ;;  %p2063_p8 = pmov %p2060_p4 }
  0xf9   : > { %p2064_p5 = pmov %p2060_p4 }
  0xfa   : > { %1546 = vsyncadd (%p2063_p8), [#allocation9], 4294967040 }
  0xfb   : > { %1548 = dma.done.wait (%p2064_p5), [#allocation12], 80   ;;  %p2065_p7 = pmov %p2060_p4 }
  0xfc   : > { %p2066_p6 = pmov %p2060_p4 }
  0xfd   : > { %1550 = vsyncadd (%p2065_p7), [#allocation12], 4294967216 }
  0xfe   : > { %1552 = dma.done.wait (%p2066_p6), [#allocation15], 528   ;;  %p2067_p9 = pmov %p2060_p4 }
  0xff   : > { %v1586_v0 = vmov 0   ;;  %vm492_vm0 = vcmask 64512   ;;  %v1964_v1 = vld [vmem:[%s387_s28] sm:$0xff]  ;;  %v454_v2 = vld [vmem:[#allocation5] sm:$0xff]  ;;  %v455_v3 = vld [vmem:[#allocation5 + $0x8] sm:$0xff]  ;;  %v1587_v11 = vmov 0.0|0.0  }
 0x100   : > { %1554 = vsyncadd (%p2067_p9), [#allocation15], 4294966768  ;;  %1235 = vset.pattern.permute.xlu0 %v1586_v0  ;;  %1236 = vset.pattern.permute.xlu1 %v1586_v0  ;;  %v456_v4 = vld [vmem:[#allocation5 + $0x10] sm:$0xff]  ;;  %v458_v5 = vld [vmem:[#allocation7] sm:$0xff]  ;;  %vm1588_vm1 = vmmov 0   ;;  %v1589_v12 = vmov 0.0  }
 0x101   : > { %1055 = vmatprep.subr.mxu0 %v1964_v1  ;;  %1057 = vmatprep.mubr.msk.f32.mxu0 %vm492_vm0, %v454_v2  ;;  %v460_v6 = vld [vmem:[#allocation7 + $0x10] sm:$0xff]  ;;  %v459_v7 = vld [vmem:[#allocation7 + $0x8] sm:$0xff]  ;;  %v457_v8 = vld [vmem:[#allocation5 + $0x18] sm:$0xff]  ;;  %vm599_vm2 = vcmask 261120   ;;  %vm684_vm3 = vcmask 1043456   ;;  %vm680_vm4 = vcmask 31744  }
 0x102   : > { %1056 = vmatpush3.msra.mxu0 %v1964_v1  ;;  %474 = vperm.xlu0 %1235, %v458_v5   ;;  %v461_v9 = vld [vmem:[#allocation7 + $0x18] sm:$0xff]  ;;  %v463_v10 = vld [vmem:[#allocation10] sm:$0xff]  ;;  %v462_v31 = vld [vmem:[#allocation8] sm:$0xff]  ;;  %s1035_s16 = sshll.u32 %s1662_s15, 7  ;;  %s453_s25 = scalar_lea.vmem [#allocation17], %s1014_s13 }
 0x103   : > { %1058 = vmatmul.mubr.msk.f32.vlgmr.msra.gmra.mrb[0].mxu0 %vm492_vm0, %v455_v3  ;;  %484 = vperm.xlu1 %1236, %v460_v6   ;;  %v464_v32 = vld [vmem:[#allocation11] sm:$0xf]  ;;  %v466_v33 = vld [vmem:[#allocation14] sm:$0xff]  ;;  %v467_v34 = vld [vmem:[#allocation14 + $0x8] sm:$0xff]  ;;  %s854_s18 = sshll.u32 %s453_s25, 4  ;;  %s2068_s21 = sld [smem:[#allocation25_spill]]  ;;  %s1987_s18 = int_to_ptr.vmem [resolvable:$true] %s854_s18 }
 0x104   : > { %1060 = vmatprep.mubr.msk.f32.mxu0 %vm492_vm0, %v456_v4  ;;  %1090 = vmatprep.subr.bf16.mxu0 %v1587_v11  ;;  %v1097_v39 = vpack.c.bf16 %v467_v34, %v466_v33  ;;  %v468_v41 = vld [vmem:[#allocation14 + $0x10] sm:$0xff]  ;;  %v469_v42 = vld [vmem:[#allocation14 + $0x18] sm:$0xff]  ;;  %v1032_v49 = vld [vmem:[#allocation16] ss:$0 sm:$0xff]  ;;  %s841_s14 = scalar_lea.sflag [#allocation4], %s1938_s23  ;;  %s1491_s15 = scalar_lea.vmem %s1987_s18, 128 }
 0x105   : > { %1074 = vmatprep.subr.mxu1 %v1589_v12  ;;  %1076 = vmatprep.mubr.msk.f32.mxu1 %vm1588_vm1, %v1589_v12  ;;  %v1100_v43 = vpack.c.bf16 %v469_v42, %v468_v41  ;;  %v1029_v44 = vld [vmem:[#allocation13] ss:$0 sm:$0xff]  ;;  %p1492_p12 = scmp.ne.s32.totalorder %s1987_s18, %s1491_s15  ;;  %p2069_p1 = scmp.ne.s32.totalorder %s2056_s17, 0 }
 0x106   : > { %479 = vperm.xlu0 %1235, %v459_v7   ;;  %1075 = vmatpush3.msk.msra.mxu1 %vm684_vm3, %v464_v32  ;;  %s1590_s26 = smov [#allocation17]  }
 0x107   : > { %1061 = vmatmul.mubr.msk.f32.gmra.mrb[2].mxu0 %vm492_vm0, %v457_v8  ;;  %489 = vperm.xlu1 %1236, %v461_v9   ;;  %p1493_p13 = pnand %p1492_p12, %p2069_p1  ;;  %s1495_s29 = sshll.u32 %s1590_s26, 4  ;;  %s1496_s29 = int_to_ptr.vmem [resolvable:$false] %s1495_s29 }
 0x108   : > { %1071 = vmatprep.mubr.msk.f32.mxu0 %vm1588_vm1, %v1589_v12  ;;  %1096 = vmatprep.subr.bf16.mxu1 %v1587_v11  ;;  %s1497_s13 = scalar_lea.vmem %s1496_s29, 256  ;;  %p1498_p2 = scmp.lt.s32.totalorder %s1987_s18, %s1496_s29 }
 0x109   : > { %s1985_s1 = scalar_lea.hbm %s2068_s21, %s1035_s16  ;;  %p1494_p0 = pneg %p1493_p13 }
 0x10a   : > { %596 = vperm.xlu0 %1235, %v463_v10   ;;  %p1499_p3 = scmp.lt.s32.totalorder %s1497_s13, %s1491_s15 }
 0x10c   : > { %p1500_p4 = por %p1499_p3, %p1498_p2 }
 0x10e   : > { %p1501_p10 = pnand %p1500_p4, %p1494_p0 }
 0x181   : > { %v475_v13 = vpop.permute.xlu0 %474 }
 0x182   : > { %v485_v14 = vpop.permute.xlu1 %484 }
 0x185   : > { %v480_v15 = vpop.permute.xlu0 %479 }
 0x186   : > { %v490_v21 = vpop.permute.xlu1 %489 }
 0x189   : > { %v597_v35 = vpop.permute.xlu0 %596 }
 0x1d6   : > { %v1059_v16 = vpop.f32.mrb[0].mxu0 }
 0x1d7   : > { %v577_v17 = vadd.f32 %v1059_v16, %v480_v15  ;;  %v571_v18 = vpop.f32.mrb[1].mxu0 }
 0x1d8   : > { %v572_v19 = vadd.f32 %v571_v18, %v475_v13 }
 0x1d9   : > { %v591_v20 = vmax.f32 %v577_v17, 0.0 }
 0x1da   : > { %v590_v22 = vmax.f32 %v572_v19, 0.0  ;;  %v1062_v23 = vpop.f32.mrb[2].mxu0 }
 0x1db   : > { %v587_v24 = vadd.f32 %v1062_v23, %v490_v21  ;;  %v581_v25 = vpop.f32.mrb[3].mxu0 }
 0x1dc   : > { %v1091_v26 = vpack.c.bf16 %v591_v20, %v590_v22  ;;  %v582_v27 = vadd.f32 %v581_v25, %v485_v14 }
 0x1dd   : > { %v593_v28 = vmax.f32 %v587_v24, 0.0 }
 0x1de   : > { %v592_v29 = vmax.f32 %v582_v27, 0.0  ;;  %1092 = vmatpush3.bf16.msra.mxu0 %v1091_v26 }
 0x1df   : > { %1093 = vmatprep.subr.bf16.mxu0 %v1587_v11 }
 0x1e0   : > { %v1094_v30 = vpack.c.bf16 %v593_v28, %v592_v29 }
 0x1e2   : > { %1095 = vmatpush3.bf16.msra.mxu0 %v1094_v30 }
 0x1e5   : > { %1072 = vmatmul.mubr.msk.f32.vlgmr.msra.gmra.mrb[4].mxu0 %vm599_vm2, %v462_v31 }
 0x2b8   : > { %v669_v36 = vpop.f32.mrb[4].mxu0 }
 0x2b9   : > { %v670_v37 = vadd.f32 %v669_v36, %v597_v35  ;;  %v1073_v38 = vpop.f32.mrb[5].mxu0 }
 0x2bb   : > { %v673_v40 = vadd.f32 %v670_v37, %v1964_v1 }
 0x2bd   : > { %1077 = vmatmul.mubr.msk.f32.vlgmr.msra.gmra.mrb[0].mxu1 %vm680_vm4, %v673_v40 }
 0x2be   : > { %1098 = vmatpush3.bf16.msra.mxu1 %v1097_v39  ;;  %1087 = vmatprep.mubr.msk.f32.mxu1 %vm1588_vm1, %v1589_v12 }
 0x2bf   : > { %1099 = vmatprep.subr.bf16.mxu1 %v1587_v11 }
 0x2c2   : > { %1101 = vmatpush3.bf16.msra.mxu1 %v1100_v43 }
 0x390   : > { %v754_v45 = vpop.f32.mrb[0].mxu1 }
 0x391   : > { %v755_v46 = vadd.f32 %v1029_v44, %v754_v45  ;;  %v1078_v47 = vpop.f32.mrb[1].mxu1 }
 0x393   : > { %v758_v48 = vmax.f32 %v755_v46, 0.0 }
 0x395   : > { %1088 = vmatmul.mubr.msk.f32.vlgmr.msra.gmra.mrb[2].mxu1 %vm599_vm2, %v758_v48 }
 0x468   : > { %v834_v50 = vpop.f32.mrb[2].mxu1 }
 0x469   : > { %v835_v51 = vadd.f32 %v1032_v49, %v834_v50  ;;  %v1089_v52 = vpop.f32.mrb[3].mxu1 }
 0x46b   : > { %v838_v53 = vadd.f32 %v835_v51, %v673_v40 }
 0x46d   : > { %839 = vst.msk [vmem:[%s453_s25] sm:$0xff] %vm680_vm4, %v838_v53 }
 0x46e   : > { %1504 = shalt.err (!%p1501_p10)
}
 0x46f   : > { %s1505_s23 = scalar_lea.hbm %s1985_s1, 128  ;;  %s1509_s16 = scalar_lea.hbm %s2068_s21, 256 }
 0x470   : > { %p1506_p11 = scmp.ne.s32.totalorder %s1985_s1, %s1505_s23  ;;  %p1510_p7 = scmp.lt.u32.totalorder %s1985_s1, %s2068_s21 }
 0x471   : > { %p1511_p6 = scmp.lt.u32.totalorder %s1509_s16, %s1505_s23  ;;  %p1513_p12 = scmp.lt.u32.totalorder %s1505_s23, %s1985_s1 }
 0x472   : > { %p1507_p8 = pnand %p1506_p11, %p2069_p1 }
 0x473   : > { %p1512_p9 = por %p1511_p6, %p1510_p7 }
 0x474   : > { %p1508_p5 = pneg %p1507_p8 }
 0x475   : > { %p1514_p13 = por %p1513_p12, %p1512_p9 }
 0x477   : > { %p1515_p0 = pnand %p1514_p13, %p1508_p5 }
 0x479   : > { %1518 = shalt.err (!%p1515_p0)
}
 0x47a   : > { %1136 = dma.vmem_to_hbm [thread:$0]  (%p2069_p1), %s1987_s18, 128, %s1985_s1, %s841_s14  }
 0x47b PF: > { %s866_s27 = sand.u32 1, %s1561_s30   ;;  %p2070_p2 = scmp.ne.s32.totalorder %s2057_s22, 0 }
 0x47c   : > { %p2071_p3 = scmp.ge.s32.totalorder %s1573_s12, 2  ;;  %s867_s15 = scalar_lea.sflag [#allocation4], %s866_s27 }
 0x47e   : > { %p1168_p4 = pnand %p2071_p3, %p2070_p2 }
 0x480   : > { %1556 = dma.done.wait (!%p1168_p4), %s867_s15, 128  }
 0x481   : > { %1558 = vsyncadd (!%p1168_p4), %s867_s15, 4294967168  ;;  %p26_p10 = scmp.ge.s32.totalorder %s1862_s19, 4   ;;  %s2072_s30 = smov %s1565_s10 }
 0x482   : > { %s2073_s10 = smov %s1569_s11  ;;  %s2074_s11 = smov %s1873_s20 }
 0x483   : > { %s2075_s12 = smov %s1862_s19  ;;  %28 = sbr.rel (!%p26_p10) target bundleno = 12 (0xc), region = 133 }
 0x48a   :  { %872 = vsyncpa [#allocation3], 1 }
 0x48b   :  { %874 = vsyncpa [#allocation3 + $0x1], 1 }
 0x48c   :  { %875 = vsyncpa [#allocation6], 1 }
 0x48d   :  { %876 = vsyncpa [#allocation9], 1 }
 0x48e   :  { %877 = vsyncpa [#allocation12], 1 }
 0x48f   :  { %878 = vsyncpa [#allocation15], 1 }
 0x490   :  { %879 = vsyncpa [#allocation4], 1 }
 0x491   :  { %881 = vsyncpa [#allocation4 + $0x1], 1 }

</bundles_post_ra>
